<compile_context>
chip_gen: v7x
topology: tpu7x:2x2x1
jax: 0.10.0
libtpu: 0.0.40
codegen_flags: <defaults>
</compile_context>

<pallas_src>
import functools

import numpy as np

import jax
import jax.numpy as jnp
from jax.experimental import pallas as pl
from jax.experimental.pallas import tpu as pltpu


K = 3            # conv kernel size
C1 = 32          # conv1 out channels (reduced stem)
C2 = 48          # conv2 out channels
FEAT = 1024      # timm num_classes feature width
N_OUT = 30       # cls / reg head width
HEAD_PAD = 128   # lane-dense fused head: [cls(30) | reg(30) | zeros(68)]


# ----------------------------------------------------------------------------
# The single fused Pallas kernel
# ----------------------------------------------------------------------------
def _fused_forward_kernel(p1_ref, w1_ref, b1_ref, w2_ref, b2_ref, pool_ref,
                          wc_ref, bc_ref, o_ref, h_scr, *, acc_rows, tap_offsets):
    # conv1 as one MXU matmul over "thick" patches:
    #   (B*P0*P1, 63) bf16 @ (63, P2*C1) bf16 -> f32, bias + ReLU.
    h = jnp.dot(p1_ref[...], w1_ref[...], preferred_element_type=jnp.float32)
    h = jnp.maximum(h + b1_ref[...], 0.0)
    h_scr[...] = h.astype(h_scr.dtype)                       # (B*P0*P1, P2*C1) bf16

    # conv2: sum over the 9 (dz,dy) taps of (acc_rows, 96) @ (96, C2); each tap's
    # LHS is a contiguous row slab of the conv1 scratch (junk rows are pooled
    # with weight 0 later), each tap's RHS is a contiguous 96-row slice of w2.
    kk = K * C1
    acc = None
    for t, off in enumerate(tap_offsets):
        lhs = h_scr[pl.ds(off, acc_rows), :]
        rhs = w2_ref[pl.ds(t * kk, kk), :]
        part = jnp.dot(lhs, rhs, preferred_element_type=jnp.float32)
        acc = part if acc is None else acc + part
    h2 = jnp.maximum(acc + b2_ref[...], 0.0)                  # (acc_rows, C2) f32

    # Global average pool ('avg'): constant (B, acc_rows) pooling matrix, f32.
    pooled = jnp.dot(pool_ref[...], h2, preferred_element_type=jnp.float32)

    # Collapsed fc(C2->1024) ∘ [cls||reg](1024->60) head: one f32 (C2,128) matmul.
    out = jnp.dot(pooled, wc_ref[...], preferred_element_type=jnp.float32) + bc_ref[...]
    o_ref[...] = out.astype(o_ref.dtype)                      # (B, 128) lane-dense


def fused_forward_call(p1big, prep, pool, *, batch, acc_rows, tap_offsets, n_rows_h):
    kernel = functools.partial(_fused_forward_kernel,
                               acc_rows=acc_rows, tap_offsets=tap_offsets)
    full = lambda i: (0, 0)
    return pl.pallas_call(
        kernel,
        out_shape=jax.ShapeDtypeStruct((batch, HEAD_PAD), jnp.float32),
        grid=(1,),
        in_specs=[
            pl.BlockSpec(p1big.shape, full),
            pl.BlockSpec(prep["w1"].shape, full),
            pl.BlockSpec(prep["b1"].shape, full),
            pl.BlockSpec(prep["w2"].shape, full),
            pl.BlockSpec(prep["b2"].shape, full),
            pl.BlockSpec(pool.shape, full),
            pl.BlockSpec(prep["wc"].shape, full),
            pl.BlockSpec(prep["bc"].shape, full),
        ],
        out_specs=pl.BlockSpec((batch, HEAD_PAD), full),
        scratch_shapes=[pltpu.VMEM((n_rows_h, prep["w1"].shape[1]), jnp.bfloat16)],
        compiler_params=pltpu.CompilerParams(dimension_semantics=("parallel",)),
    )(p1big, prep["w1"], prep["b1"], prep["w2"], prep["b2"], pool,
      prep["wc"], prep["bc"])


# ----------------------------------------------------------------------------
# Parameters: raw init + one-time (outside jit) inference preparation
# ----------------------------------------------------------------------------
def init_params(key):
    """Deterministic synthetic parameters (He-ish scaling), conv weights stored as
    (k^3*Cin, Cout) with row = ((d0*3+d1)*3+d2)*Cin + cin, taps ordered (dH,dW,dD)."""
    ks = jax.random.split(key, 5)

    def dense(kk, fan_in, fan_out):
        w = jax.random.normal(kk, (fan_in, fan_out), jnp.float32) / jnp.sqrt(float(fan_in))
        b = jnp.zeros((fan_out,), jnp.float32)
        return w, b

    p = {}
    p["conv1_w"], p["conv1_b"] = dense(ks[0], K ** 3 * 1, C1)
    p["conv2_w"], p["conv2_b"] = dense(ks[1], K ** 3 * C1, C2)
    p["fc_w"], p["fc_b"] = dense(ks[2], C2, FEAT)        # timm classifier -> 1024
    p["cls_w"], p["cls_b"] = dense(ks[3], FEAT, N_OUT)   # nn.Linear(1024, 30)
    p["reg_w"], p["reg_b"] = dense(ks[4], FEAT, N_OUT)   # nn.Linear(1024, 30)
    return p


def prepare_inference_params(params):
    """One-time weight prep OUTSIDE jit: bf16 casts, conv1 'thick-patch' weight
    (produces all P2=3 depth positions at once so conv2 slabs are 2-D), and exact
    collapse of fc∘[cls||reg] into a single f32 (C2,128) weight + (1,128) bias."""
    w1 = np.asarray(params["conv1_w"], np.float32)            # (27, C1)
    b1 = np.asarray(params["conv1_b"], np.float32)            # (C1,)
    p2 = K                                                    # depth outputs per plane
    d_need = 2 * (p2 - 1) + K                                 # 7 input depth taps
    w1big = np.zeros((K * K * d_need, p2 * C1), np.float32)
    for dh in range(K):
        for dw in range(K):
            for z in range(p2):
                for dd in range(K):
                    d = 2 * z + dd
                    w1big[(dh * K + dw) * d_need + d, z * C1:(z + 1) * C1] = \
                        w1[(dh * K + dw) * K + dd, :]
    b1big = np.tile(b1, p2)[None, :]                          # (1, p2*C1)

    head_w = jnp.concatenate([params["cls_w"], params["reg_w"],
                              jnp.zeros((FEAT, HEAD_PAD - 2 * N_OUT), jnp.float32)],
                             axis=1)                          # (1024, 128)
    head_b = jnp.concatenate([params["cls_b"], params["reg_b"],
                              jnp.zeros((HEAD_PAD - 2 * N_OUT,), jnp.float32)])
    wc = params["fc_w"] @ head_w                              # (C2, 128) f32, exact
    bc = (params["fc_b"] @ head_w + head_b)[None, :]          # (1, 128) f32

    return {
        "w1": jnp.asarray(w1big, jnp.bfloat16),               # (63, 96)
        "b1": jnp.asarray(b1big, jnp.float32),                # (1, 96)
        "w2": params["conv2_w"].astype(jnp.bfloat16),         # (864, 48)
        "b2": params["conv2_b"].reshape(1, -1),               # (1, 48) f32
        "wc": wc,                                             # (48, 128) f32
        "bc": bc,                                             # (1, 128) f32
    }


# ----------------------------------------------------------------------------
# Forward
# ----------------------------------------------------------------------------
def rsna24_keypoint_3d_cls_forward(prep, x):
    """x: (B, D, H, W) float32.  Returns (reg, cls), each (B, 30) float32."""
    B, D, H, W = x.shape
    # torch glue: x.unsqueeze(1).permute(0,1,3,4,2) -> conv spatial order (H, W, D).
    xt = jnp.transpose(x, (0, 2, 3, 1))                       # (B, H, W, D)

    P0 = (H - K) // 2 + 1
    P1 = (W - K) // 2 + 1
    P2 = (D - K) // 2 + 1
    assert P2 == K, "reduced stem assumes exactly 3 conv1 depth positions"
    Q0, Q1 = P0 - (K - 1), P1 - (K - 1)
    d_need = 2 * (P2 - 1) + K

    # conv1 im2col over (H, W) only; each row carries the whole needed depth fibre.
    cols = []
    for dh in range(K):
        for dw in range(K):
            cols.append(xt[:, dh:dh + 2 * (P0 - 1) + 1:2,
                           dw:dw + 2 * (P1 - 1) + 1:2, :d_need])   # (B, P0, P1, 7)
    p1big = jnp.stack(cols, axis=3).reshape(B * P0 * P1, K * K * d_need)
    p1big = p1big.astype(jnp.bfloat16)                        # (B*49, 63)

    # Trace-time constant pooling matrix: averages the Q0*Q1 valid conv2 rows per
    # batch out of the acc_rows slab (junk rows get weight 0).
    plane = P0 * P1
    acc_rows = (B - 1) * plane + (Q0 - 1) * P1 + (Q1 - 1) + 1
    pool_np = np.zeros((B, acc_rows), np.float32)
    for b in range(B):
        for q0 in range(Q0):
            for q1 in range(Q1):
                pool_np[b, b * plane + q0 * P1 + q1] = 1.0 / (Q0 * Q1)
    pool = jnp.asarray(pool_np)

    tap_offsets = tuple(dz * P1 + dy for dz in range(K) for dy in range(K))

    out = fused_forward_call(p1big, prep, pool, batch=B, acc_rows=acc_rows,
                             tap_offsets=tap_offsets, n_rows_h=B * plane)  # (B, 128)
    cls = out[:, :N_OUT]
    reg = out[:, N_OUT:2 * N_OUT]
    return reg, cls


if __name__ == "__main__":
    key = jax.random.PRNGKey(0)
    k_param, k_input = jax.random.split(key)

    params = init_params(k_param)
    prep = prepare_inference_params(params)      # one-time weight prep, outside jit

    # small shapes: batch=2, depth(slices)=8, H=W=16
    x = jax.random.normal(k_input, (2, 8, 16, 16), jnp.float32)

    fwd = jax.jit(rsna24_keypoint_3d_cls_forward)
    reg, cls = fwd(prep, x)
    reg = jax.block_until_ready(reg)
    cls = jax.block_until_ready(cls)

    assert reg.shape == (2, 30) and cls.shape == (2, 30)
    assert reg.dtype == jnp.float32 and cls.dtype == jnp.float32
    print("KERNEL_OK")
</pallas_src>

<mosaic_0001>
module attributes {stable_mosaic.version = 11 : i64} {
  func.func @_fused_forward_kernel(%arg0: i32, %arg1: memref<98x63xbf16, #tpu.memory_space<vmem>>, %arg2: memref<63x96xbf16, #tpu.memory_space<vmem>>, %arg3: memref<1x96xf32, #tpu.memory_space<vmem>>, %arg4: memref<864x48xbf16, #tpu.memory_space<vmem>>, %arg5: memref<1x48xf32, #tpu.memory_space<vmem>>, %arg6: memref<2x82xf32, #tpu.memory_space<vmem>>, %arg7: memref<48x128xf32, #tpu.memory_space<vmem>>, %arg8: memref<1x128xf32, #tpu.memory_space<vmem>>, %arg9: memref<2x128xf32, #tpu.memory_space<vmem>>, %arg10: memref<98x96xbf16, #tpu.memory_space<vmem>>) attributes {dimension_semantics = [#tpu.dimension_semantics<parallel>], iteration_bounds = array<i64: 1>, scalar_prefetch = 0 : i64, scratch_operands = 1 : i64, tpu.core_type = #tpu.core_type<tc>, window_params = [{pipeline_mode = #tpu.pipeline_mode<synchronous>, transform_indices = @transform_0, window_bounds = array<i64: 98, 63>}, {pipeline_mode = #tpu.pipeline_mode<synchronous>, transform_indices = @transform_1, window_bounds = array<i64: 63, 96>}, {pipeline_mode = #tpu.pipeline_mode<synchronous>, transform_indices = @transform_2, window_bounds = array<i64: 1, 96>}, {pipeline_mode = #tpu.pipeline_mode<synchronous>, transform_indices = @transform_3, window_bounds = array<i64: 864, 48>}, {pipeline_mode = #tpu.pipeline_mode<synchronous>, transform_indices = @transform_4, window_bounds = array<i64: 1, 48>}, {pipeline_mode = #tpu.pipeline_mode<synchronous>, transform_indices = @transform_5, window_bounds = array<i64: 2, 82>}, {pipeline_mode = #tpu.pipeline_mode<synchronous>, transform_indices = @transform_6, window_bounds = array<i64: 48, 128>}, {pipeline_mode = #tpu.pipeline_mode<synchronous>, transform_indices = @transform_7, window_bounds = array<i64: 1, 128>}, {pipeline_mode = #tpu.pipeline_mode<synchronous>, transform_indices = @transform_8, window_bounds = array<i64: 2, 128>}]} {
    %c0 = arith.constant 0 : index
    %c0_0 = arith.constant 0 : index
    %0 = vector.load %arg1[%c0, %c0_0] : memref<98x63xbf16, #tpu.memory_space<vmem>>, vector<98x63xbf16>
    %c0_1 = arith.constant 0 : index
    %c0_2 = arith.constant 0 : index
    %1 = vector.load %arg2[%c0_1, %c0_2] : memref<63x96xbf16, #tpu.memory_space<vmem>>, vector<63x96xbf16>
    %cst = arith.constant dense<0.000000e+00> : vector<98x96xf32>
    %2 = tpu.matmul %0, %1, %cst {dimension_numbers = #tpu.dot_dimension_numbers<[1], [0], [0], [1], [0, 0, 1, 1], [], []>} : vector<98x63xbf16>, vector<63x96xbf16>, vector<98x96xf32> -> vector<98x96xf32>
    %c0_3 = arith.constant 0 : index
    %c0_4 = arith.constant 0 : index
    %3 = vector.load %arg3[%c0_3, %c0_4] : memref<1x96xf32, #tpu.memory_space<vmem>>, vector<1x96xf32>
    %4 = vector.broadcast %3 : vector<1x96xf32> to vector<98x96xf32>
    %5 = arith.addf %2, %4 : vector<98x96xf32>
    %cst_5 = arith.constant 0.000000e+00 : f32
    %6 = vector.broadcast %cst_5 : f32 to vector<98x96xf32>
    %7 = arith.maximumf %5, %6 : vector<98x96xf32>
    %8 = arith.truncf %7 : vector<98x96xf32> to vector<98x96xbf16>
    %c0_6 = arith.constant 0 : index
    %c0_7 = arith.constant 0 : index
    %9 = vector.load %arg10[%c0_6, %c0_7] : memref<98x96xbf16, #tpu.memory_space<vmem>>, vector<98x96xbf16>
    tpu.vector_store %arg10[%c0_6, %c0_7], %8 {strides = array<i32>} : memref<98x96xbf16, #tpu.memory_space<vmem>>, vector<98x96xbf16>,
    %c0_8 = arith.constant 0 : index
    %c0_9 = arith.constant 0 : index
    %10 = vector.load %arg10[%c0_8, %c0_9] : memref<98x96xbf16, #tpu.memory_space<vmem>>, vector<82x96xbf16>
    %c0_10 = arith.constant 0 : index
    %c0_11 = arith.constant 0 : index
    %11 = vector.load %arg4[%c0_10, %c0_11] : memref<864x48xbf16, #tpu.memory_space<vmem>>, vector<96x48xbf16>
    %cst_12 = arith.constant dense<0.000000e+00> : vector<82x48xf32>
    %12 = tpu.matmul %10, %11, %cst_12 {dimension_numbers = #tpu.dot_dimension_numbers<[1], [0], [0], [1], [0, 0, 1, 1], [], []>} : vector<82x96xbf16>, vector<96x48xbf16>, vector<82x48xf32> -> vector<82x48xf32>
    %c1 = arith.constant 1 : index
    %c0_13 = arith.constant 0 : index
    %13 = vector.load %arg10[%c1, %c0_13] : memref<98x96xbf16, #tpu.memory_space<vmem>>, vector<82x96xbf16>
    %c96 = arith.constant 96 : index
    %c0_14 = arith.constant 0 : index
    %14 = vector.load %arg4[%c96, %c0_14] : memref<864x48xbf16, #tpu.memory_space<vmem>>, vector<96x48xbf16>
    %cst_15 = arith.constant dense<0.000000e+00> : vector<82x48xf32>
    %15 = tpu.matmul %13, %14, %cst_15 {dimension_numbers = #tpu.dot_dimension_numbers<[1], [0], [0], [1], [0, 0, 1, 1], [], []>} : vector<82x96xbf16>, vector<96x48xbf16>, vector<82x48xf32> -> vector<82x48xf32>
    %16 = arith.addf %12, %15 : vector<82x48xf32>
    %c2 = arith.constant 2 : index
    %c0_16 = arith.constant 0 : index
    %17 = vector.load %arg10[%c2, %c0_16] : memref<98x96xbf16, #tpu.memory_space<vmem>>, vector<82x96xbf16>
    %c192 = arith.constant 192 : index
    %c0_17 = arith.constant 0 : index
    %18 = vector.load %arg4[%c192, %c0_17] : memref<864x48xbf16, #tpu.memory_space<vmem>>, vector<96x48xbf16>
    %cst_18 = arith.constant dense<0.000000e+00> : vector<82x48xf32>
    %19 = tpu.matmul %17, %18, %cst_18 {dimension_numbers = #tpu.dot_dimension_numbers<[1], [0], [0], [1], [0, 0, 1, 1], [], []>} : vector<82x96xbf16>, vector<96x48xbf16>, vector<82x48xf32> -> vector<82x48xf32>
    %20 = arith.addf %16, %19 : vector<82x48xf32>
    %c7 = arith.constant 7 : index
    %c0_19 = arith.constant 0 : index
    %21 = vector.load %arg10[%c7, %c0_19] : memref<98x96xbf16, #tpu.memory_space<vmem>>, vector<82x96xbf16>
    %c288 = arith.constant 288 : index
    %c0_20 = arith.constant 0 : index
    %22 = vector.load %arg4[%c288, %c0_20] : memref<864x48xbf16, #tpu.memory_space<vmem>>, vector<96x48xbf16>
    %cst_21 = arith.constant dense<0.000000e+00> : vector<82x48xf32>
    %23 = tpu.matmul %21, %22, %cst_21 {dimension_numbers = #tpu.dot_dimension_numbers<[1], [0], [0], [1], [0, 0, 1, 1], [], []>} : vector<82x96xbf16>, vector<96x48xbf16>, vector<82x48xf32> -> vector<82x48xf32>
    %24 = arith.addf %20, %23 : vector<82x48xf32>
    %c8 = arith.constant 8 : index
    %c0_22 = arith.constant 0 : index
    %25 = vector.load %arg10[%c8, %c0_22] : memref<98x96xbf16, #tpu.memory_space<vmem>>, vector<82x96xbf16>
    %c384 = arith.constant 384 : index
    %c0_23 = arith.constant 0 : index
    %26 = vector.load %arg4[%c384, %c0_23] : memref<864x48xbf16, #tpu.memory_space<vmem>>, vector<96x48xbf16>
    %cst_24 = arith.constant dense<0.000000e+00> : vector<82x48xf32>
    %27 = tpu.matmul %25, %26, %cst_24 {dimension_numbers = #tpu.dot_dimension_numbers<[1], [0], [0], [1], [0, 0, 1, 1], [], []>} : vector<82x96xbf16>, vector<96x48xbf16>, vector<82x48xf32> -> vector<82x48xf32>
    %28 = arith.addf %24, %27 : vector<82x48xf32>
    %c9 = arith.constant 9 : index
    %c0_25 = arith.constant 0 : index
    %29 = vector.load %arg10[%c9, %c0_25] : memref<98x96xbf16, #tpu.memory_space<vmem>>, vector<82x96xbf16>
    %c480 = arith.constant 480 : index
    %c0_26 = arith.constant 0 : index
    %30 = vector.load %arg4[%c480, %c0_26] : memref<864x48xbf16, #tpu.memory_space<vmem>>, vector<96x48xbf16>
    %cst_27 = arith.constant dense<0.000000e+00> : vector<82x48xf32>
    %31 = tpu.matmul %29, %30, %cst_27 {dimension_numbers = #tpu.dot_dimension_numbers<[1], [0], [0], [1], [0, 0, 1, 1], [], []>} : vector<82x96xbf16>, vector<96x48xbf16>, vector<82x48xf32> -> vector<82x48xf32>
    %32 = arith.addf %28, %31 : vector<82x48xf32>
    %c14 = arith.constant 14 : index
    %c0_28 = arith.constant 0 : index
    %33 = vector.load %arg10[%c14, %c0_28] : memref<98x96xbf16, #tpu.memory_space<vmem>>, vector<82x96xbf16>
    %c576 = arith.constant 576 : index
    %c0_29 = arith.constant 0 : index
    %34 = vector.load %arg4[%c576, %c0_29] : memref<864x48xbf16, #tpu.memory_space<vmem>>, vector<96x48xbf16>
    %cst_30 = arith.constant dense<0.000000e+00> : vector<82x48xf32>
    %35 = tpu.matmul %33, %34, %cst_30 {dimension_numbers = #tpu.dot_dimension_numbers<[1], [0], [0], [1], [0, 0, 1, 1], [], []>} : vector<82x96xbf16>, vector<96x48xbf16>, vector<82x48xf32> -> vector<82x48xf32>
    %36 = arith.addf %32, %35 : vector<82x48xf32>
    %c15 = arith.constant 15 : index
    %c0_31 = arith.constant 0 : index
    %37 = vector.load %arg10[%c15, %c0_31] : memref<98x96xbf16, #tpu.memory_space<vmem>>, vector<82x96xbf16>
    %c672 = arith.constant 672 : index
    %c0_32 = arith.constant 0 : index
    %38 = vector.load %arg4[%c672, %c0_32] : memref<864x48xbf16, #tpu.memory_space<vmem>>, vector<96x48xbf16>
    %cst_33 = arith.constant dense<0.000000e+00> : vector<82x48xf32>
    %39 = tpu.matmul %37, %38, %cst_33 {dimension_numbers = #tpu.dot_dimension_numbers<[1], [0], [0], [1], [0, 0, 1, 1], [], []>} : vector<82x96xbf16>, vector<96x48xbf16>, vector<82x48xf32> -> vector<82x48xf32>
    %40 = arith.addf %36, %39 : vector<82x48xf32>
    %c16 = arith.constant 16 : index
    %c0_34 = arith.constant 0 : index
    %41 = vector.load %arg10[%c16, %c0_34] : memref<98x96xbf16, #tpu.memory_space<vmem>>, vector<82x96xbf16>
    %c768 = arith.constant 768 : index
    %c0_35 = arith.constant 0 : index
    %42 = vector.load %arg4[%c768, %c0_35] : memref<864x48xbf16, #tpu.memory_space<vmem>>, vector<96x48xbf16>
    %cst_36 = arith.constant dense<0.000000e+00> : vector<82x48xf32>
    %43 = tpu.matmul %41, %42, %cst_36 {dimension_numbers = #tpu.dot_dimension_numbers<[1], [0], [0], [1], [0, 0, 1, 1], [], []>} : vector<82x96xbf16>, vector<96x48xbf16>, vector<82x48xf32> -> vector<82x48xf32>
    %44 = arith.addf %40, %43 : vector<82x48xf32>
    %c0_37 = arith.constant 0 : index
    %c0_38 = arith.constant 0 : index
    %45 = vector.load %arg5[%c0_37, %c0_38] : memref<1x48xf32, #tpu.memory_space<vmem>>, vector<1x48xf32>
    %46 = vector.broadcast %45 : vector<1x48xf32> to vector<82x48xf32>
    %47 = arith.addf %44, %46 : vector<82x48xf32>
    %cst_39 = arith.constant 0.000000e+00 : f32
    %48 = vector.broadcast %cst_39 : f32 to vector<82x48xf32>
    %49 = arith.maximumf %47, %48 : vector<82x48xf32>
    %c0_40 = arith.constant 0 : index
    %c0_41 = arith.constant 0 : index
    %50 = vector.load %arg6[%c0_40, %c0_41] : memref<2x82xf32, #tpu.memory_space<vmem>>, vector<2x82xf32>
    %cst_42 = arith.constant dense<0.000000e+00> : vector<2x48xf32>
    %51 = tpu.matmul %50, %49, %cst_42 {dimension_numbers = #tpu.dot_dimension_numbers<[1], [0], [0], [1], [0, 0, 1, 1], [], []>} : vector<2x82xf32>, vector<82x48xf32>, vector<2x48xf32> -> vector<2x48xf32>
    %c0_43 = arith.constant 0 : index
    %c0_44 = arith.constant 0 : index
    %52 = vector.load %arg7[%c0_43, %c0_44] : memref<48x128xf32, #tpu.memory_space<vmem>>, vector<48x128xf32>
    %cst_45 = arith.constant dense<0.000000e+00> : vector<2x128xf32>
    %53 = tpu.matmul %51, %52, %cst_45 {dimension_numbers = #tpu.dot_dimension_numbers<[1], [0], [0], [1], [0, 0, 1, 1], [], []>} : vector<2x48xf32>, vector<48x128xf32>, vector<2x128xf32> -> vector<2x128xf32>
    %c0_46 = arith.constant 0 : index
    %c0_47 = arith.constant 0 : index
    %54 = vector.load %arg8[%c0_46, %c0_47] : memref<1x128xf32, #tpu.memory_space<vmem>>, vector<1x128xf32>
    %55 = vector.broadcast %54 : vector<1x128xf32> to vector<2x128xf32>
    %56 = arith.addf %53, %55 : vector<2x128xf32>
    %c0_48 = arith.constant 0 : index
    %c0_49 = arith.constant 0 : index
    %57 = vector.load %arg9[%c0_48, %c0_49] : memref<2x128xf32, #tpu.memory_space<vmem>>, vector<2x128xf32>
    tpu.vector_store %arg9[%c0_48, %c0_49], %56 {strides = array<i32>} : memref<2x128xf32, #tpu.memory_space<vmem>>, vector<2x128xf32>,
    return
  }
  func.func @transform_0(%arg0: i32) -> (i32, i32) {
    %c0_i32 = arith.constant 0 : i32
    %c0_i32_0 = arith.constant 0 : i32
    %c0_i32_1 = arith.constant 0 : i32
    return %c0_i32, %c0_i32_0 : i32, i32
  }
  func.func @transform_1(%arg0: i32) -> (i32, i32) {
    %c0_i32 = arith.constant 0 : i32
    %c0_i32_0 = arith.constant 0 : i32
    %c0_i32_1 = arith.constant 0 : i32
    return %c0_i32, %c0_i32_0 : i32, i32
  }
  func.func @transform_2(%arg0: i32) -> (i32, i32) {
    %c0_i32 = arith.constant 0 : i32
    %c0_i32_0 = arith.constant 0 : i32
    %c0_i32_1 = arith.constant 0 : i32
    return %c0_i32, %c0_i32_0 : i32, i32
  }
  func.func @transform_3(%arg0: i32) -> (i32, i32) {
    %c0_i32 = arith.constant 0 : i32
    %c0_i32_0 = arith.constant 0 : i32
    %c0_i32_1 = arith.constant 0 : i32
    return %c0_i32, %c0_i32_0 : i32, i32
  }
  func.func @transform_4(%arg0: i32) -> (i32, i32) {
    %c0_i32 = arith.constant 0 : i32
    %c0_i32_0 = arith.constant 0 : i32
    %c0_i32_1 = arith.constant 0 : i32
    return %c0_i32, %c0_i32_0 : i32, i32
  }
  func.func @transform_5(%arg0: i32) -> (i32, i32) {
    %c0_i32 = arith.constant 0 : i32
    %c0_i32_0 = arith.constant 0 : i32
    %c0_i32_1 = arith.constant 0 : i32
    return %c0_i32, %c0_i32_0 : i32, i32
  }
  func.func @transform_6(%arg0: i32) -> (i32, i32) {
    %c0_i32 = arith.constant 0 : i32
    %c0_i32_0 = arith.constant 0 : i32
    %c0_i32_1 = arith.constant 0 : i32
    return %c0_i32, %c0_i32_0 : i32, i32
  }
  func.func @transform_7(%arg0: i32) -> (i32, i32) {
    %c0_i32 = arith.constant 0 : i32
    %c0_i32_0 = arith.constant 0 : i32
    %c0_i32_1 = arith.constant 0 : i32
    return %c0_i32, %c0_i32_0 : i32, i32
  }
  func.func @transform_8(%arg0: i32) -> (i32, i32) {
    %c0_i32 = arith.constant 0 : i32
    %c0_i32_0 = arith.constant 0 : i32
    %c0_i32_1 = arith.constant 0 : i32
    return %c0_i32, %c0_i32_0 : i32, i32
  }
}

</mosaic_0001>

<bundles_post_ra>
// kernel: rsna24_keypoint_3d_cls_forward.1
= control target key start
LH: loop header
LB: loop body
LE: loop exit
PB: predicated region body
PF: predicated region fallthrough
CT: control target
= control target key end

     0   :  { %v3085_v0 = vmov 0.0   ;;  %vm136_vm0 = vcmask 1046528   ;;  %vm3086_vm1 = vmmov 0   ;;  %vm137_vm2 = vcmask 1047552   ;;  %s3664_s1 = inlined_call_operand.vmem [shape: bf16[63,96], index: 1, kind: input, shape index: {}]   ;;  %s3665_s0 = inlined_call_operand.vmem [shape: bf16[98,63], index: 0, kind: input, shape index: {}]   ;;  %s3666_s3 = inlined_call_operand.vmem [shape: bf16[864,48], index: 3, kind: input, shape index: {}]   ;;  %s3667_s2 = inlined_call_operand.vmem [shape: f32[1,96], index: 2, kind: input, shape index: {}]   ;;  %s3668_s4 = inlined_call_operand.vmem [shape: f32[1,48], index: 4, kind: input, shape index: {}]   ;;  %s3669_s6 = inlined_call_operand.vmem [shape: f32[48,128], index: 6, kind: input, shape index: {}]   ;;  %s3670_s5 = inlined_call_operand.vmem [shape: f32[2,82], index: 5, kind: input, shape index: {}]   ;;  %s3671_s7 = inlined_call_operand.vmem [shape: f32[1,128], index: 7, kind: input, shape index: {}]   ;;  %s3672_s8 = inlined_call_operand.vmem [shape: f32[2,128], index: 8, kind: output, shape index: {}]  }
   0x1   :  { %2606 = vmatprep.subr.bf16.mxu0 %v3085_v0  ;;  %v2990_v1 = vld [vmem:[%s3664_s1] sm:$0xff]   ;;  %v2991_v2 = vld [vmem:[%s3664_s1 + $0x8] sm:$0xff]   ;;  %2614 = vmatprep.mubr.msk.bf16.mxu0 %vm3086_vm1, %v3085_v0  ;;  %v3087_v3 = vmov 65535   ;;  %v2992_v5 = vld [vmem:[%s3664_s1 + $0x10] sm:$0xff]   ;;  %vm114_vm3 = vcmask 515072   ;;  %vm297_vm4 = vcmask 781312  }
   0x2   :  { %2607 = vmatpush3.bf16.msra.mxu0 %v2990_v1  ;;  %v138_v4 = vsel %vm136_vm0, 4294967295, %v3087_v3  ;;  %v2993_v6 = vld [vmem:[%s3664_s1 + $0x18] sm:$0xff]   ;;  %v2994_v9 = vld [vmem:[%s3665_s0] sm:$0xff]   ;;  %v2995_v10 = vld [vmem:[%s3665_s0 + $0x8] sm:$0xff]   ;;  %vm376_vm5 = vsmask.f32 7424 }
   0x3   :  { %2608 = vmatprep.subr.bf16.mxu0 %v3085_v0  ;;  %v139_v7 = vsel %vm137_vm2, %v138_v4, 0  ;;  %v2996_v11 = vld [vmem:[%s3665_s0 + $0x10] sm:$0xff]   ;;  %v2997_v12 = vld [vmem:[%s3665_s0 + $0x18] sm:$0xff]   ;;  %v2998_v13 = vld [vmem:[%s3665_s0 + $0x20] sm:$0xff]   ;;  %vm460_vm6 = vcmask 785408   ;;  %vm310_vm8 = vcmask 778240  }
   0x4   :  { %v141_v8 = vand.u32 %v2993_v6, %v139_v7  ;;  %v2999_v14 = vld [vmem:[%s3665_s0 + $0x28] sm:$0xff]   ;;  %v3000_v15 = vld [vmem:[%s3665_s0 + $0x30] ss:$0 sps:$4 sm:$0x11]   ;;  %v3003_v18 = vld [vmem:[%s3666_s3 + $0x38] sm:$0xff]   ;;  %vm1503_vm9 = vcmask 1044480  }
   0x5   :  { %v3001_v16 = vld [vmem:[%s3666_s3 + $0x30] sm:$0xff]   ;;  %v3004_v19 = vld [vmem:[%s3666_s3 + $0x98] sm:$0xff]   ;;  %v3005_v20 = vld [vmem:[%s3666_s3 + $0x40] sm:$0xff]   ;;  %vm918_vm7 = vsmask.f32 4352  ;;  %vm2109_vm10 = vcmask 1041408  }
   0x6   :  { %2609 = vmatpush3.bf16.msra.mxu0 %v2991_v2  ;;  %v3002_v17 = vld [vmem:[%s3666_s3 + $0x90] sm:$0xff]   ;;  %v3006_v21 = vld [vmem:[%s3666_s3 + $0xa0] sm:$0xff]   ;;  %v3007_v22 = vld [vmem:[%s3666_s3 + $0x48] sm:$0xff]   ;;  %vm2105_vm11 = vcmask 670720   ;;  %vm2196_vm12 = vcmask 392192  }
   0x7   :  { %2610 = vmatprep.subr.bf16.mxu0 %v3085_v0  ;;  %2714 = vmatprep.subr.bf16.mxu1 %v3002_v17  ;;  %v3008_v23 = vld [vmem:[%s3666_s3 + $0xa8] sm:$0xff]   ;;  %v3009_v24 = vld [vmem:[%s3666_s3 + $0x50] sm:$0xff]   ;;  %v3016_v26 = vld [vmem:[%s3666_s3 + $0x58] sm:$0xff]  }
   0x8   :  { %2715 = vmatpush3.bf16.msra.mxu1 %v3002_v17  ;;  %v3012_v25 = vld [vmem:[%s3666_s3 + $0xb0] sm:$0xff]   ;;  %v3017_v27 = vld [vmem:[%s3666_s3 + $0xb8] sm:$0xff]   ;;  %v3232_v28 = vld [vmem:[%s3666_s3] sm:$0xff]  }
   0x9   :  { %2716 = vmatprep.subr.bf16.mxu1 %v3004_v19  ;;  %v3238_v29 = vld [vmem:[%s3666_s3 + $0xc0] sm:$0xff]  }
   0xa   :  { %2611 = vmatpush3.bf16.msra.mxu0 %v2992_v5  ;;  %v3244_v30 = vld [vmem:[%s3667_s2] ss:$0 sm:$0xff] }
   0xb   :  { %2612 = vmatprep.subr.bf16.mxu0 %v3085_v0 }
   0xc   :  { %2717 = vmatpush3.bf16.msra.mxu1 %v3004_v19 }
   0xd   :  { %2718 = vmatprep.subr.bf16.mxu1 %v3006_v21 }
   0xe   :  { %2613 = vmatpush3.bf16.msra.mxu0 %v141_v8 }
   0xf   :  { %2642 = vmatprep.subr.bf16.mxu0 %v3001_v16 }
  0x10   :  { %2719 = vmatpush3.bf16.msra.mxu1 %v3006_v21 }
  0x11   :  { %2615 = vmatmul.mubr.msk.bf16.vlgmr.msra.gmra.mrb[0].mxu0 %vm114_vm3, %v2994_v9  ;;  %2720 = vmatprep.subr.bf16.mxu1 %v3008_v23 }
  0x12   :  { %2618 = vmatprep.mubr.msk.bf16.mxu0 %vm3086_vm1, %v3085_v0  ;;  %2643 = vmatpush3.bf16.msra.mxu0 %v3001_v16 }
  0x13   :  { %2644 = vmatprep.subr.bf16.mxu0 %v3003_v18 }
  0x14   :  { %2721 = vmatpush3.bf16.msra.mxu1 %v3008_v23 }
  0x15   :  { %2722 = vmatprep.subr.bf16.mxu1 %v3012_v25 }
  0x16   :  { %2645 = vmatpush3.bf16.msra.mxu0 %v3003_v18 }
  0x17   :  { %2646 = vmatprep.subr.bf16.mxu0 %v3005_v20 }
  0x18   :  { %2723 = vmatpush3.bf16.msra.mxu1 %v3012_v25 }
  0x19   :  { %2619 = vmatmul.mubr.msk.bf16.gmra.mrb[4].mxu0 %vm114_vm3, %v2995_v10  ;;  %2724 = vmatprep.subr.bf16.mxu1 %v3017_v27 }
  0x1a   :  { %2622 = vmatprep.mubr.msk.bf16.mxu0 %vm3086_vm1, %v3085_v0  ;;  %2647 = vmatpush3.bf16.msra.mxu0 %v3005_v20 }
  0x1b   :  { %2648 = vmatprep.subr.bf16.mxu0 %v3007_v22 }
  0x1c   :  { %2725 = vmatpush3.bf16.msra.mxu1 %v3017_v27 }
  0x1d   :  { %2738 = vmatprep.subr.bf16.mxu1 %v3238_v29 }
  0x1e   :  { %2649 = vmatpush3.bf16.msra.mxu0 %v3007_v22 }
  0x1f   :  { %2650 = vmatprep.subr.bf16.mxu0 %v3009_v24 }
  0x21   :  { %2623 = vmatmul.mubr.msk.bf16.gmra.mrb[8].mxu0 %vm114_vm3, %v2996_v11 }
  0x22   :  { %2626 = vmatprep.mubr.msk.bf16.mxu0 %vm3086_vm1, %v3085_v0  ;;  %2651 = vmatpush3.bf16.msra.mxu0 %v3009_v24 }
  0x23   :  { %2652 = vmatprep.subr.bf16.mxu0 %v3016_v26 }
  0x26   :  { %2653 = vmatpush3.bf16.msra.mxu0 %v3016_v26 }
  0x27   :  { %2666 = vmatprep.subr.bf16.mxu0 %v3232_v28 }
  0x29   :  { %2627 = vmatmul.mubr.msk.bf16.gmra.mrb[12].mxu0 %vm114_vm3, %v2997_v12 }
  0x2a   :  { %2630 = vmatprep.mubr.msk.bf16.mxu0 %vm3086_vm1, %v3085_v0 }
  0x31   :  { %2631 = vmatmul.mubr.msk.bf16.gmra.mrb[16].mxu0 %vm114_vm3, %v2998_v13 }
  0x32   :  { %2634 = vmatprep.mubr.msk.bf16.mxu0 %vm3086_vm1, %v3085_v0 }
  0x39   :  { %2635 = vmatmul.mubr.msk.bf16.gmra.mrb[20].mxu0 %vm114_vm3, %v2999_v14 }
  0x3a   :  { %2638 = vmatprep.mubr.msk.bf16.mxu0 %vm3086_vm1, %v3085_v0 }
  0x41   :  { %2639 = vmatmul.mubr.msk.bf16.gmra.mrb[24].mxu0 %vm114_vm3, %v3000_v15 }
  0xe4   :  { %v177_v31 = vpop.f32.mrb[0].mxu0 }
  0xe5   :  { %v178_v32 = vadd.f32 %v3244_v30, %v177_v31  ;;  %v2616_v33 = vpop.f32.mrb[1].mxu0 }
  0xe6   :  { %v180_v34 = vpop.f32.mrb[2].mxu0 }
  0xe7   :  { %v231_v35 = vmax.f32 %v178_v32, 0.0  ;;  %v181_v36 = vadd.f32 %v3244_v30, %v180_v34  ;;  %v2617_v37 = vpop.f32.mrb[3].mxu0 }
  0xe9   :  { %v2455_v38 = vpack.c.bf16 %v231_v35, %v231_v35  ;;  %v232_v39 = vmax.f32 %v181_v36, 0.0 }
  0xeb   :  { %298 = vst.msk [vmem:[#allocation2] sm:$0xf] %vm297_vm4, %v2455_v38  ;;  %v2456_v40 = vpack.c.bf16 %v232_v39, %v232_v39 }
  0xec   :  { %v185_v41 = vpop.f32.mrb[4].mxu0 }
  0xed   :  { %299 = vst.msk [vmem:[#allocation2 + $0x4] sm:$0xf] %vm297_vm4, %v2456_v40  ;;  %v186_v42 = vadd.f32 %v3244_v30, %v185_v41  ;;  %v2620_v43 = vpop.f32.mrb[5].mxu0 }
  0xee   :  { %v188_v44 = vpop.f32.mrb[6].mxu0 }
  0xef   :  { %v233_v45 = vmax.f32 %v186_v42, 0.0  ;;  %v189_v46 = vadd.f32 %v3244_v30, %v188_v44  ;;  %v2621_v47 = vpop.f32.mrb[7].mxu0 }
  0xf1   :  { %v2457_v48 = vpack.c.bf16 %v233_v45, %v233_v45  ;;  %v234_v49 = vmax.f32 %v189_v46, 0.0 }
  0xf2   :  { %v312_v51 = vld [vmem:[#allocation2] sm:$0xf] }
  0xf3   :  { %300 = vst.msk [vmem:[#allocation2 + $0x8] sm:$0xf] %vm297_vm4, %v2457_v48  ;;  %v2458_v50 = vpack.c.bf16 %v234_v49, %v234_v49  ;;  %v864_v58 = vld [vmem:[#allocation2] sm:$0x8] }
  0xf4   :  { %v193_v52 = vpop.f32.mrb[8].mxu0  ;;  %v3253_v53 = vld [vmem:[#allocation2 + $0x4] sm:$0xf] }
  0xf5   :  { %v3255_v54 = vld [vmem:[#allocation2 + $0x4] sm:$0xf]  ;;  %301 = vst.msk [vmem:[#allocation2 + $0xc] sm:$0xf] %vm297_vm4, %v2458_v50  ;;  %v194_v55 = vadd.f32 %v3244_v30, %v193_v52  ;;  %v2624_v56 = vpop.f32.mrb[9].mxu0  ;;  %v3260_v57 = vcombine.low %v312_v51, %v3253_v53 }
  0xf6   :  { %v196_v59 = vpop.f32.mrb[10].mxu0  ;;  %v2351_v60 = vcombine.low %v864_v58, %v3255_v54 }
  0xf7   :  { %v235_v61 = vmax.f32 %v194_v55, 0.0  ;;  %v197_v62 = vadd.f32 %v3244_v30, %v196_v59  ;;  %v2625_v63 = vpop.f32.mrb[11].mxu0  ;;  %v380_v1 = vshll.u32 %v3260_v57, 16  ;;  %v378_v16 = vshrl.u32 %v3260_v57, 16 }
  0xf8   :  { %v920_v4 = vshrl.u32 %v2351_v60, 16  ;;  %v923_v5 = vshll.u32 %v2351_v60, 16  ;;  %v3023_v63 = vld [vmem:[%s3666_s3 + $0x8] sm:$0xff]  }
  0xf9   :  { %v2459_v2 = vpack.c.bf16 %v235_v61, %v235_v61  ;;  %v236_v3 = vmax.f32 %v197_v62, 0.0  ;;  %v382_v7 = vrot.slane %v380_v1, 1 }
  0xfa   :  { %v3266_v8 = vld [vmem:[#allocation2 + $0x8] sm:$0xf]  ;;  %v922_v18 = vrot.slane %v920_v4, 3  ;;  %v925_v19 = vrot.slane %v923_v5, 4 }
  0xfb   :  { %302 = vst.msk [vmem:[#allocation2 + $0x10] sm:$0xf] %vm297_vm4, %v2459_v2  ;;  %v2460_v6 = vpack.c.bf16 %v236_v3, %v236_v3  ;;  %v383_v25 = vor.u32 %v382_v7, %v378_v16  ;;  %v3024_v5 = vld [vmem:[%s3666_s3 + $0xc8] sm:$0xff]   ;;  %v3026_v16 = vld [vmem:[%s3666_s3 + $0x10] sm:$0xff]  }
  0xfc   :  { %v201_v9 = vpop.f32.mrb[12].mxu0  ;;  %v3268_v10 = vld [vmem:[#allocation2 + $0x8] sm:$0xff]   ;;  %v926_v37 = vor.u32 %v925_v19, %v922_v18 }
  0xfd   :  { %v3270_v11 = vld [vmem:[#allocation2 + $0xc] sm:$0xf]  ;;  %303 = vst.msk [vmem:[#allocation2 + $0x14] sm:$0xf] %vm297_vm4, %v2460_v6  ;;  %v202_v12 = vadd.f32 %v3244_v30, %v201_v9  ;;  %v2628_v13 = vpop.f32.mrb[13].mxu0  ;;  %v385_v17 = vshll.u32 %v3268_v10, 16 }
  0xfe   :  { %v2352_v14 = vcombine.low %v3266_v8, %v3270_v11  ;;  %v204_v15 = vpop.f32.mrb[14].mxu0  ;;  %v389_v46 = vshrl.u32 %v3268_v10, 16 }
  0xff   :  { %v237_v20 = vmax.f32 %v202_v12, 0.0  ;;  %v205_v21 = vadd.f32 %v3244_v30, %v204_v15  ;;  %v2629_v22 = vpop.f32.mrb[15].mxu0  ;;  %v387_v26 = vrot.slane %v385_v17, 1 }
 0x100   :  { %v928_v23 = vshrl.u32 %v2352_v14, 16  ;;  %v931_v24 = vshll.u32 %v2352_v14, 16 }
 0x101   :  { %v2461_v27 = vpack.c.bf16 %v237_v20, %v237_v20  ;;  %v238_v31 = vmax.f32 %v205_v21, 0.0  ;;  %v388_v34 = vsel %vm376_vm5, %v383_v25, %v387_v26  ;;  %v391_v56 = vor.u32 %v389_v46, %v387_v26  ;;  %v3028_v26 = vld [vmem:[%s3666_s3 + $0xd0] sm:$0xff]  }
 0x102   :  { %v930_v32 = vrot.slane %v928_v23, 3  ;;  %v933_v33 = vrot.slane %v931_v24, 4  ;;  %2654 = vmatprep.mubr.msk.bf16.mxu0 %vm460_vm6, %v388_v34  ;;  %v3282_v36 = vld [vmem:[#allocation2 + $0x10] sm:$0xf]  ;;  %v3029_v34 = vld [vmem:[%s3666_s3 + $0x18] sm:$0xff]  }
 0x103   :  { %304 = vst.msk [vmem:[#allocation2 + $0x18] sm:$0xf] %vm297_vm4, %v2461_v27  ;;  %v2462_v35 = vpack.c.bf16 %v238_v31, %v238_v31 }
 0x104   :  { %v934_v38 = vor.u32 %v933_v33, %v930_v32  ;;  %v209_v39 = vpop.f32.mrb[16].mxu0  ;;  %v3284_v40 = vld [vmem:[#allocation2 + $0x10] sm:$0xff]  }
 0x105   :  { %v3286_v41 = vld [vmem:[#allocation2 + $0x14] sm:$0xf]  ;;  %305 = vst.msk [vmem:[#allocation2 + $0x1c] sm:$0xf] %vm297_vm4, %v2462_v35  ;;  %v210_v42 = vadd.f32 %v3244_v30, %v209_v39  ;;  %v2632_v43 = vpop.f32.mrb[17].mxu0  ;;  %v393_v48 = vshll.u32 %v3284_v40, 16 }
 0x106   :  { %v935_v44 = vsel %vm918_vm7, %v926_v37, %v934_v38  ;;  %v2353_v45 = vcombine.low %v3282_v36, %v3286_v41  ;;  %v212_v47 = vpop.f32.mrb[18].mxu0  ;;  %v3031_v39 = vld [vmem:[%s3666_s3 + $0xd8] sm:$0xff]  }
 0x107   :  { %2726 = vmatprep.mubr.msk.bf16.mxu1 %vm460_vm6, %v935_v44  ;;  %v239_v49 = vmax.f32 %v210_v42, 0.0  ;;  %v213_v50 = vadd.f32 %v3244_v30, %v212_v47  ;;  %v2633_v51 = vpop.f32.mrb[19].mxu0  ;;  %v395_v58 = vrot.slane %v393_v48, 1  ;;  %v3032_v48 = vld [vmem:[%s3666_s3 + $0x20] sm:$0xff]  }
 0x108   :  { %v937_v52 = vshrl.u32 %v2353_v45, 16  ;;  %v940_v55 = vshll.u32 %v2353_v45, 16 }
 0x109   :  { %v2463_v59 = vpack.c.bf16 %v239_v49, %v239_v49  ;;  %v240_v60 = vmax.f32 %v213_v50, 0.0  ;;  %v396_v1 = vsel %vm376_vm5, %v391_v56, %v395_v58 }
 0x10a   :  { %v939_v61 = vrot.slane %v937_v52, 3  ;;  %v942_v62 = vrot.slane %v940_v55, 4  ;;  %2655 = vmatmul.mubr.msk.bf16.vlgmr.msra.gmra.mrb[28].mxu0 %vm460_vm6, %v396_v1  ;;  %v3303_v4 = vld [vmem:[#allocation2 + $0x18] sm:$0xf] }
 0x10b   :  { %306 = vst.msk [vmem:[#allocation2 + $0x20] sm:$0xf] %vm297_vm4, %v2463_v59  ;;  %v2464_v2 = vpack.c.bf16 %v240_v60, %v240_v60  ;;  %2667 = vmatpush3.bf16.msra.mxu0 %v3232_v28  ;;  %v397_v28 = vshrl.u32 %v3284_v40, 16 }
 0x10c   :  { %v943_v3 = vor.u32 %v942_v62, %v939_v61  ;;  %v217_v6 = vpop.f32.mrb[20].mxu0  ;;  %v3308_v7 = vld [vmem:[#allocation2 + $0x18] sm:$0xff]   ;;  %2668 = vmatprep.subr.bf16.mxu0 %v3023_v63  ;;  %v3034_v61 = vld [vmem:[%s3666_s3 + $0xe0] sm:$0xff]  }
 0x10d   :  { %v3311_v9 = vld [vmem:[#allocation2 + $0x1c] sm:$0xf]  ;;  %307 = vst.msk [vmem:[#allocation2 + $0x24] sm:$0xf] %vm297_vm4, %v2464_v2  ;;  %v218_v12 = vadd.f32 %v3244_v30, %v217_v6  ;;  %v2636_v13 = vpop.f32.mrb[21].mxu0  ;;  %v401_v18 = vshll.u32 %v3308_v7, 16  ;;  %v399_v24 = vor.u32 %v397_v28, %v395_v58 }
 0x10e   :  { %v944_v14 = vsel %vm918_vm7, %v934_v38, %v943_v3  ;;  %v2354_v15 = vcombine.low %v3303_v4, %v3311_v9  ;;  %v220_v17 = vpop.f32.mrb[22].mxu0  ;;  %v405_v50 = vshrl.u32 %v3308_v7, 16  ;;  %v3035_v2 = vld [vmem:[%s3666_s3 + $0x28] sm:$0xff]  }
 0x10f   :  { %2727 = vmatmul.mubr.msk.bf16.vlgmr.msra.gmra.mrb[0].mxu1 %vm460_vm6, %v944_v14  ;;  %v241_v19 = vmax.f32 %v218_v12, 0.0  ;;  %v221_v20 = vadd.f32 %v3244_v30, %v220_v17  ;;  %v2637_v21 = vpop.f32.mrb[23].mxu0  ;;  %v403_v25 = vrot.slane %v401_v18, 1  ;;  %2669 = vmatpush3.bf16.msra.mxu0 %v3023_v63  ;;  %v3036_v12 = vld [vmem:[%s3666_s3 + $0xe8] sm:$0xff]   ;;  %v3037_v18 = vld [vmem:[%s3666_s3 + $0x60] sm:$0xff]  }
 0x110   :  { %v946_v22 = vshrl.u32 %v2354_v15, 16  ;;  %v949_v23 = vshll.u32 %v2354_v15, 16  ;;  %2739 = vmatpush3.bf16.msra.mxu1 %v3238_v29  ;;  %2670 = vmatprep.subr.bf16.mxu0 %v3026_v16 }
 0x111   :  { %2740 = vmatprep.subr.bf16.mxu1 %v3024_v5  ;;  %v2465_v27 = vpack.c.bf16 %v241_v19, %v241_v19  ;;  %v242_v31 = vmax.f32 %v221_v20, 0.0  ;;  %v404_v35 = vsel %vm376_vm5, %v399_v24, %v403_v25  ;;  %v407_v59 = vor.u32 %v405_v50, %v403_v25 }
 0x112   :  { %v948_v32 = vrot.slane %v946_v22, 3  ;;  %v951_v33 = vrot.slane %v949_v23, 4  ;;  %2658 = vmatprep.mubr.msk.bf16.mxu0 %vm460_vm6, %v404_v35  ;;  %v3335_v38 = vld [vmem:[#allocation2 + $0x20] sm:$0xf]  ;;  %v3039_v35 = vld [vmem:[%s3666_s3 + $0x68] sm:$0xff]  }
 0x113   :  { %308 = vst.msk [vmem:[#allocation2 + $0x28] sm:$0xf] %vm297_vm4, %v2465_v27  ;;  %v2466_v29 = vpack.c.bf16 %v242_v31, %v242_v31  ;;  %2671 = vmatpush3.bf16.msra.mxu0 %v3026_v16 }
 0x114   :  { %v952_v37 = vor.u32 %v951_v33, %v948_v32  ;;  %2741 = vmatpush3.bf16.msra.mxu1 %v3024_v5  ;;  %v225_v42 = vpop.f32.mrb[24].mxu0  ;;  %v3340_v43 = vld [vmem:[#allocation2 + $0x20] sm:$0xff]   ;;  %2672 = vmatprep.subr.bf16.mxu0 %v3029_v34 }
 0x115   :  { %v3342_v44 = vld [vmem:[#allocation2 + $0x24] sm:$0xf]  ;;  %2742 = vmatprep.subr.bf16.mxu1 %v3028_v26  ;;  %309 = vst.msk [vmem:[#allocation2 + $0x2c] sm:$0xf] %vm297_vm4, %v2466_v29  ;;  %v226_v45 = vadd.f32 %v3244_v30, %v225_v42  ;;  %v2640_v49 = vpop.f32.mrb[25].mxu0  ;;  %v409_v51 = vshll.u32 %v3340_v43, 16  ;;  %v3409_v29 = vcombine.low %v3286_v41, %v3303_v4  ;;  %v3430_v4 = vcombine.low %v3311_v9, %v3335_v38 }
 0x116   :  { %v953_v46 = vsel %vm918_vm7, %v943_v3, %v952_v37  ;;  %v2355_v47 = vcombine.low %v3335_v38, %v3342_v44  ;;  %v228_v52 = vpop.f32.mrb[26].mxu0  ;;  %v413_v13 = vshrl.u32 %v3340_v43, 16  ;;  %v691_v41 = vld [vmem:[#allocation2] sm:$0xe]  ;;  %v709_v9 = vrot.slane %v3268_v10, 1 }
 0x117   :  { %2730 = vmatprep.mubr.msk.bf16.mxu1 %vm460_vm6, %v953_v46  ;;  %v243_v55 = vmax.f32 %v226_v45, 0.0  ;;  %v2641_v58 = vpop.f32.mrb[27].mxu0  ;;  %v411_v60 = vrot.slane %v409_v51, 1  ;;  %2673 = vmatpush3.bf16.msra.mxu0 %v3029_v34  ;;  %v2369_v34 = vcombine.low %v3255_v54, %v3266_v8  ;;  %v3040_v54 = vld [vmem:[%s3666_s3 + $0xf8] sm:$0xff]   ;;  %v2338_v42 = vcombine.low %v691_v41, %v3253_v53 }
 0x118   :  { %v955_v30 = vshrl.u32 %v2355_v47, 16  ;;  %v958_v56 = vshll.u32 %v2355_v47, 16  ;;  %2743 = vmatpush3.bf16.msra.mxu1 %v3028_v26  ;;  %2674 = vmatprep.subr.bf16.mxu0 %v3032_v48  ;;  %v3038_v26 = vld [vmem:[%s3666_s3 + $0xf0] sm:$0xff]   ;;  %v3048_v47 = vld [vmem:[%s3666_s3 + $0x80] sm:$0xff]   ;;  %v1309_v58 = vshll.u32 %v3409_v29, 16 }
 0x119   :  { %2744 = vmatprep.subr.bf16.mxu1 %v3031_v39  ;;  %v2467_v62 = vpack.c.bf16 %v243_v55, %v243_v55  ;;  %v412_v3 = vsel %vm376_vm5, %v407_v59, %v411_v60  ;;  %v415_v19 = vor.u32 %v413_v13, %v411_v60  ;;  %v1298_v45 = vshll.u32 %v2369_v34, 16 }
 0x11a   :  { %v957_v63 = vrot.slane %v955_v30, 3  ;;  %v960_v1 = vrot.slane %v958_v56, 4  ;;  %v3362_v5 = vld [vmem:[#allocation2 + $0x28] ss:$0 sps:$4 sm:$0x33]   ;;  %2659 = vmatmul.mubr.msk.bf16.gmra.mrb[32].mxu0 %vm460_vm6, %v412_v3  ;;  %v1296_v51 = vshrl.u32 %v2369_v34, 16 }
 0x11b   :  { %311 = vst.msk [vmem:[#allocation2 + $0x30] sm:$0x1] %vm310_vm8, %v2467_v62  ;;  %v417_v14 = vshll.u32 %v3362_v5, 16  ;;  %2675 = vmatpush3.bf16.msra.mxu0 %v3032_v48  ;;  %v874_v15 = vld [vmem:[#allocation2 + $0x28] sm:$0xf]  ;;  %v421_v21 = vshrl.u32 %v3362_v5, 16 }
 0x11c   :  { %v961_v6 = vor.u32 %v960_v1, %v957_v63  ;;  %2745 = vmatpush3.bf16.msra.mxu1 %v3031_v39  ;;  %v3370_v16 = vld [vmem:[#allocation2 + $0x2c] sm:$0x1]  ;;  %2676 = vmatprep.subr.bf16.mxu0 %v3035_v2  ;;  %v3437_v46 = vcombine.low %v3342_v44, %v874_v15  ;;  %v3047_v53 = vld [vmem:[#allocation2 + $0x28] ss:$0 sps:$4 sm:$0x11]   ;;  %v708_v44 = vrot.slane %v2338_v42, 1 }
 0x11d   :  { %2746 = vmatprep.subr.bf16.mxu1 %v3034_v61  ;;  %v2356_v28 = vcombine.low %v874_v15, %v3370_v16  ;;  %v419_v20 = vrot.slane %v417_v14, 1  ;;  %v3046_v39 = vld [vmem:[%s3666_s3 + $0x108] sm:$0xff]   ;;  %v3050_v48 = vld [vmem:[%s3666_s3 + $0x110] sm:$0xff]   ;;  %v1300_v49 = vrot.slane %v1298_v45, 1  ;;  %v2374_v55 = vcombine.low %v3370_v16, %v3370_v16  ;;  %v3052_v56 = vld [vmem:[%s3666_s3 + $0x118] sm:$0xff]  }
 0x11e   :  { %v962_v17 = vsel %vm918_vm7, %v952_v37, %v961_v6  ;;  %v3041_v37 = vld [vmem:[%s3666_s3 + $0x70] sm:$0xff]   ;;  %v710_v50 = vsel %vm136_vm0, %v708_v44, %v709_v9  ;;  %v711_v60 = vrot.slane %v3284_v40, 1  ;;  %v713_v62 = vrot.slane %v3308_v7, 1  ;;  %v3053_v1 = vld [vmem:[%s3666_s3 + $0x120] sm:$0xff]   ;;  %v3054_v16 = vld [vmem:[%s3666_s3 + $0x128] sm:$0xff]  }
 0x11f   :  { %2731 = vmatmul.mubr.msk.bf16.gmra.mrb[4].mxu1 %vm460_vm6, %v962_v17  ;;  %v964_v22 = vshrl.u32 %v2356_v28, 16  ;;  %v967_v23 = vshll.u32 %v2356_v28, 16  ;;  %v420_v24 = vsel %vm376_vm5, %v415_v19, %v419_v20  ;;  %v423_v25 = vor.u32 %v421_v21, %v419_v20  ;;  %2677 = vmatpush3.bf16.msra.mxu0 %v3035_v2  ;;  %v3056_v13 = vld [vmem:[#allocation2 + $0x2c] ss:$0 sps:$4 sm:$0x33]  }
 0x120   :  { %2747 = vmatpush3.bf16.msra.mxu1 %v3034_v61  ;;  %2662 = vmatprep.mubr.msk.bf16.mxu0 %vm460_vm6, %v420_v24  ;;  %v1301_v30 = vor.u32 %v1300_v49, %v1296_v51  ;;  %v1316_v61 = vshll.u32 %v3430_v4, 16  ;;  %v1311_v63 = vrot.slane %v1309_v58, 1  ;;  %v712_v3 = vsel %vm136_vm0, %v709_v9, %v711_v60  ;;  %v3061_v9 = vld [vmem:[%s3666_s3 + $0x158] sm:$0xff]   ;;  %v3531_v44 = vld [vmem:[#allocation2 + $0xc] sm:$0xf] }
 0x121   :  { %2748 = vmatprep.subr.bf16.mxu1 %v3036_v12  ;;  %v966_v27 = vrot.slane %v964_v22, 3  ;;  %v969_v31 = vrot.slane %v967_v23, 4  ;;  %2690 = vmatprep.subr.bf16.mxu0 %v3037_v18  ;;  %v1331_v20 = vshll.u32 %v3056_v13, 16  ;;  %v717_v21 = vrot.slane %v3362_v5, 1  ;;  %v3055_v22 = vld [vmem:[%s3666_s3 + $0x130] sm:$0xff]   ;;  %v3057_v5 = vld [vmem:[%s3666_s3 + $0x138] sm:$0xff]  }
 0x122   :  { %2663 = vmatmul.mubr.msk.bf16.gmra.mrb[36].mxu0 %vm460_vm6, %v423_v25  ;;  %v1327_v23 = vshrl.u32 %v3437_v46, 16  ;;  %v1320_v24 = vshrl.u32 %v3430_v4, 16  ;;  %v1507_v42 = vrot.slane %v3409_v29, 3  ;;  %v1509_v45 = vrot.slane %v3430_v4, 3  ;;  %v1660_v49 = vld [vmem:[#allocation2 + $0x4] sm:$0x8] }
 0x123   :  { %v970_v32 = vor.u32 %v969_v31, %v966_v27  ;;  %2678 = vmatprep.mubr.msk.bf16.mxu0 %vm460_vm6, %v3260_v57  ;;  %v3402_v57 = vcombine.low %v3270_v11, %v3282_v36  ;;  %v3043_v11 = vld [vmem:[%s3666_s3 + $0x100] sm:$0xff]   ;;  %v3044_v36 = vld [vmem:[%s3666_s3 + $0x78] sm:$0xff]   ;;  %v1511_v51 = vrot.slane %v3437_v46, 3 }
 0x124   :  { %2749 = vmatpush3.bf16.msra.mxu1 %v3036_v12  ;;  %v1323_v12 = vshll.u32 %v3437_v46, 16  ;;  %v3545_v58 = vld [vmem:[#allocation2 + $0x20] sm:$0xf] }
 0x125   :  { %2762 = vmatprep.subr.bf16.mxu1 %v3038_v26  ;;  %v971_v33 = vsel %vm918_vm7, %v961_v6, %v970_v32  ;;  %v1302_v38 = vshll.u32 %v3402_v57, 16  ;;  %v1306_v2 = vshrl.u32 %v3402_v57, 16  ;;  %v1318_v6 = vrot.slane %v1316_v61, 1 }
 0x126   :  { %2734 = vmatprep.mubr.msk.bf16.mxu1 %vm460_vm6, %v971_v33  ;;  %v1325_v19 = vrot.slane %v1323_v12, 1  ;;  %v3065_v12 = vld [vmem:[%s3666_s3 + $0x170] sm:$0xff]  }
 0x127   :  { %2735 = vmatmul.mubr.msk.bf16.gmra.mrb[8].mxu1 %vm460_vm6, %v970_v32  ;;  %v1304_v52 = vrot.slane %v1302_v38, 1  ;;  %v1322_v31 = vor.u32 %v1320_v24, %v1318_v6 }
 0x128   :  { %2750 = vmatprep.mubr.msk.bf16.mxu1 %vm460_vm6, %v2369_v34  ;;  %v1483_v34 = vld [vmem:[#allocation2 + $0x4] sm:$0x8] }
 0x129   :  { %v1305_v59 = vsel %vm376_vm5, %v1301_v30, %v1304_v52  ;;  %v1308_v14 = vor.u32 %v1306_v2, %v1304_v52  ;;  %v1326_v32 = vsel %vm376_vm5, %v1322_v31, %v1325_v19 }
 0x12a   :  { %2679 = vmatmul.mubr.msk.bf16.vlgmr.msra.gmra.mrb[28].mxu0 %vm460_vm6, %v3268_v10  ;;  %v3051_v10 = vld [vmem:[%s3666_s3 + $0x88] sm:$0xff]  }
 0x12b   :  { %2682 = vmatprep.mubr.msk.bf16.mxu0 %vm460_vm6, %v3284_v40  ;;  %2691 = vmatpush3.bf16.msra.mxu0 %v3037_v18  ;;  %v1313_v40 = vshrl.u32 %v3409_v29, 16  ;;  %v1312_v17 = vsel %vm376_vm5, %v1308_v14, %v1311_v63  ;;  %v715_v18 = vrot.slane %v3340_v43, 1 }
 0x12c   :  { %2692 = vmatprep.subr.bf16.mxu0 %v3039_v35 }
 0x12d   :  { %v1315_v15 = vor.u32 %v1313_v40, %v1311_v63  ;;  %v716_v25 = vsel %vm136_vm0, %v713_v62, %v715_v18  ;;  %v718_v27 = vsel %vm136_vm0, %v715_v18, %v717_v21  ;;  %v1512_v63 = vsel %vm1503_vm9, %v1509_v45, %v1511_v51  ;;  %v3565_v18 = vld [vmem:[#allocation2 + $0x28] sm:$0xf] }
 0x12f   :  { %2751 = vmatmul.mubr.msk.bf16.vlgmr.msra.gmra.mrb[0].mxu1 %vm460_vm6, %v3402_v57  ;;  %2693 = vmatpush3.bf16.msra.mxu0 %v3039_v35  ;;  %v1319_v28 = vsel %vm376_vm5, %v1315_v15, %v1318_v6  ;;  %v3058_v35 = vld [vmem:[%s3666_s3 + $0x140] sm:$0xff]  }
 0x130   :  { %2754 = vmatprep.mubr.msk.bf16.mxu1 %vm460_vm6, %v3409_v29  ;;  %2763 = vmatpush3.bf16.msra.mxu1 %v3038_v26  ;;  %v1329_v26 = vor.u32 %v1327_v23, %v1325_v19  ;;  %v1510_v29 = vsel %vm1503_vm9, %v1507_v42, %v1509_v45  ;;  %v3567_v19 = vld [vmem:[#allocation2 + $0x30] sm:$0x1] }
 0x131   :  { %2764 = vmatprep.subr.bf16.mxu1 %v3040_v54  ;;  %2694 = vmatprep.subr.bf16.mxu0 %v3041_v37 }
 0x132   :  { %2683 = vmatmul.mubr.msk.bf16.gmra.mrb[32].mxu0 %vm460_vm6, %v3308_v7  ;;  %v714_v7 = vsel %vm136_vm0, %v711_v60, %v713_v62  ;;  %v3550_v60 = vld [vmem:[#allocation2 + $0x14] sm:$0xf] }
 0x133   :  { %2686 = vmatprep.mubr.msk.bf16.mxu0 %vm460_vm6, %v3340_v43  ;;  %2695 = vmatpush3.bf16.msra.mxu0 %v3041_v37  ;;  %v1333_v43 = vrot.slane %v1331_v20, 1  ;;  %v1335_v37 = vshrl.u32 %v3056_v13, 16 }
 0x134   :  { %2765 = vmatpush3.bf16.msra.mxu1 %v3040_v54  ;;  %2696 = vmatprep.subr.bf16.mxu0 %v3044_v36  ;;  %v2400_v54 = vcombine.low %v1483_v34, %v3266_v8 }
 0x135   :  { %2766 = vmatprep.subr.bf16.mxu1 %v3043_v11  ;;  %v1334_v33 = vsel %vm376_vm5, %v1329_v26, %v1333_v43  ;;  %v1670_v26 = vld [vmem:[#allocation2 + $0x2c] sm:$0xf] }
 0x136   :  { %v1504_v41 = vrot.slane %v2400_v54, 3 }
 0x137   :  { %2755 = vmatmul.mubr.msk.bf16.gmra.mrb[4].mxu1 %vm460_vm6, %v3430_v4  ;;  %2697 = vmatpush3.bf16.msra.mxu0 %v3044_v36  ;;  %v1337_v36 = vor.u32 %v1335_v37, %v1333_v43 }
 0x138   :  { %2758 = vmatprep.mubr.msk.bf16.mxu1 %vm460_vm6, %v3437_v46  ;;  %2767 = vmatpush3.bf16.msra.mxu1 %v3043_v11  ;;  %v1505_v11 = vrot.slane %v3402_v57, 3  ;;  %v3060_v57 = vld [vmem:[%s3666_s3 + $0x150] sm:$0xff]  }
 0x139   :  { %2768 = vmatprep.subr.bf16.mxu1 %v3046_v39  ;;  %2698 = vmatprep.subr.bf16.mxu0 %v3048_v47 }
 0x13a   :  { %2687 = vmatmul.mubr.msk.bf16.gmra.mrb[40].mxu0 %vm460_vm6, %v3047_v53  ;;  %v1506_v8 = vsel %vm1503_vm9, %v1504_v41, %v1505_v11  ;;  %v1508_v38 = vsel %vm1503_vm9, %v1505_v11, %v1507_v42  ;;  %v3529_v53 = vld [vmem:[#allocation2 + $0x8] sm:$0xf] }
 0x13b   :  { %2702 = vmatprep.mubr.msk.bf16.mxu0 %vm460_vm6, %v710_v50  ;;  %2699 = vmatpush3.bf16.msra.mxu0 %v3048_v47  ;;  %v3523_v47 = vld [vmem:[#allocation2 + $0x10] sm:$0xf]  ;;  %v2414_v50 = vcombine.low %v1660_v49, %v3529_v53 }
 0x13c   :  { %2769 = vmatpush3.bf16.msra.mxu1 %v3046_v39  ;;  %2700 = vmatprep.subr.bf16.mxu0 %v3051_v10  ;;  %v3059_v39 = vld [vmem:[%s3666_s3 + $0x148] sm:$0xff]   ;;  %v2415_v4 = vcombine.low %v3531_v44, %v3523_v47 }
 0x13d   :  { %2770 = vmatprep.subr.bf16.mxu1 %v3050_v48  ;;  %v1715_v61 = vshrl.u32 %v2414_v50, 16  ;;  %v1718_v62 = vshll.u32 %v2414_v50, 16  ;;  %v3080_v50 = vld [vmem:[%s3666_s3 + $0x1a8] sm:$0xff]  }
 0x13e   :  { %v1723_v30 = vshrl.u32 %v2415_v4, 16 }
 0x13f   :  { %2759 = vmatmul.mubr.msk.bf16.gmra.mrb[12].mxu1 %vm460_vm6, %v2374_v55  ;;  %2701 = vmatpush3.bf16.msra.mxu0 %v3051_v10  ;;  %v3062_v10 = vld [vmem:[%s3666_s3 + $0x160] sm:$0xff]   ;;  %v3543_v55 = vld [vmem:[#allocation2 + $0x18] sm:$0xf]  ;;  %v1717_v13 = vrot.slane %v1715_v61, 3  ;;  %v1720_v14 = vrot.slane %v1718_v62, 4 }
 0x140   :  { %2771 = vmatpush3.bf16.msra.mxu1 %v3050_v48  ;;  %2774 = vmatprep.mubr.msk.bf16.mxu1 %vm460_vm6, %v1305_v59  ;;  %v3063_v48 = vld [vmem:[#allocation2 + $0x2c] ss:$0 sps:$4 sm:$0xff]   ;;  %v2416_v46 = vcombine.low %v3550_v60, %v3543_v55 }
 0x141   :  { %2772 = vmatprep.subr.bf16.mxu1 %v3052_v56  ;;  %v1513_v52 = vrot.slane %v3063_v48, 3  ;;  %v3064_v59 = vld [vmem:[%s3666_s3 + $0x168] sm:$0xff]   ;;  %v1721_v20 = vor.u32 %v1720_v14, %v1717_v13  ;;  %v3077_v48 = vld [vmem:[%s3666_s3 + $0x198] sm:$0xff]  }
 0x142   :  { %2703 = vmatmul.mubr.msk.bf16.vlgmr.msra.gmra.mrb[28].mxu0 %vm460_vm6, %v712_v3  ;;  %v1725_v3 = vrot.slane %v1723_v30, 3  ;;  %v1735_v15 = vshll.u32 %v2416_v46, 16 }
 0x143   :  { %2706 = vmatprep.mubr.msk.bf16.mxu0 %vm460_vm6, %v714_v7  ;;  %v1514_v2 = vsel %vm1503_vm9, %v1511_v51, %v1513_v52  ;;  %v1732_v7 = vshrl.u32 %v2416_v46, 16  ;;  %v2432_v51 = vcombine.low %v3529_v53, %v3531_v44  ;;  %v2436_v53 = vcombine.low %v3565_v18, %v1670_v26 }
 0x144   :  { %2773 = vmatpush3.bf16.msra.mxu1 %v3052_v56  ;;  %v1726_v56 = vshll.u32 %v2415_v4, 16  ;;  %v1737_v24 = vrot.slane %v1735_v15, 4  ;;  %v2437_v44 = vcombine.low %v3567_v19, %v3567_v19 }
 0x145   :  { %2786 = vmatprep.subr.bf16.mxu1 %v3053_v1  ;;  %v1734_v23 = vrot.slane %v1732_v7, 3 }
 0x146   :  { %v1728_v40 = vrot.slane %v1726_v56, 4 }
 0x147   :  { %2775 = vmatmul.mubr.msk.bf16.vlgmr.msra.gmra.mrb[0].mxu1 %vm460_vm6, %v1312_v17 }
 0x148   :  { %2778 = vmatprep.mubr.msk.bf16.mxu1 %vm460_vm6, %v1319_v28  ;;  %2787 = vmatpush3.bf16.msra.mxu1 %v3053_v1  ;;  %v3555_v1 = vld [vmem:[#allocation2 + $0x1c] sm:$0xf] }
 0x149   :  { %2788 = vmatprep.subr.bf16.mxu1 %v3054_v16  ;;  %v2417_v6 = vcombine.low %v3555_v1, %v3545_v58  ;;  %v2434_v30 = vcombine.low %v3543_v55, %v3555_v1 }
 0x14a   :  { %2707 = vmatmul.mubr.msk.bf16.gmra.mrb[32].mxu0 %vm460_vm6, %v716_v25 }
 0x14b   :  { %2710 = vmatprep.mubr.msk.bf16.mxu0 %vm460_vm6, %v718_v27  ;;  %v1741_v17 = vshrl.u32 %v2417_v6, 16  ;;  %v1744_v28 = vshll.u32 %v2417_v6, 16 }
 0x14c   :  { %2789 = vmatpush3.bf16.msra.mxu1 %v3054_v16  ;;  %v1729_v16 = vor.u32 %v1728_v40, %v1725_v3 }
 0x14d   :  { %2790 = vmatprep.subr.bf16.mxu1 %v3055_v22  ;;  %v1743_v27 = vrot.slane %v1741_v17, 3  ;;  %v1746_v31 = vrot.slane %v1744_v28, 4 }
 0x14e   :  { %v1730_v43 = vsel %vm918_vm7, %v1721_v20, %v1729_v16 }
 0x14f   :  { %2779 = vmatmul.mubr.msk.bf16.gmra.mrb[4].mxu1 %vm460_vm6, %v1326_v32  ;;  %v3071_v32 = vld [vmem:[%s3666_s3 + $0x180] sm:$0xff]   ;;  %v1747_v54 = vor.u32 %v1746_v31, %v1743_v27 }
 0x150   :  { %2782 = vmatprep.mubr.msk.bf16.mxu1 %vm460_vm6, %v1334_v33  ;;  %2791 = vmatpush3.bf16.msra.mxu1 %v3055_v22  ;;  %v1668_v22 = vld [vmem:[#allocation2 + $0x24] sm:$0xf]  ;;  %v1738_v33 = vor.u32 %v1737_v24, %v1734_v23 }
 0x151   :  { %2792 = vmatprep.subr.bf16.mxu1 %v3057_v5  ;;  %v2418_v25 = vcombine.low %v1668_v22, %v3565_v18  ;;  %v2435_v56 = vcombine.low %v3545_v58, %v1668_v22 }
 0x152   :  { %2711 = vmatmul.mubr.msk.bf16.gmra.mrb[44].mxu0 %vm460_vm6, %v717_v21  ;;  %v3070_v21 = vld [vmem:[%s3666_s3 + $0x178] sm:$0xff]   ;;  %v1739_v41 = vsel %vm918_vm7, %v1729_v16, %v1738_v33 }
 0x153   :  { %2880 = vmatprep.mubr.msk.f32.mxu0 %vm3086_vm1, %v3085_v0  ;;  %v1750_v34 = vshrl.u32 %v2418_v25, 16 }
 0x154   :  { %2793 = vmatpush3.bf16.msra.mxu1 %v3057_v5  ;;  %v2419_v5 = vcombine.low %v1670_v26, %v3567_v19 }
 0x155   :  { %2794 = vmatprep.subr.bf16.mxu1 %v3058_v35 }
 0x156   :  { %v1759_v37 = vshrl.u32 %v2419_v5, 16  ;;  %v1762_v11 = vshll.u32 %v2419_v5, 16 }
 0x157   :  { %2783 = vmatmul.mubr.msk.bf16.gmra.mrb[16].mxu1 %vm460_vm6, %v1337_v36  ;;  %v3073_v36 = vld [vmem:[%s3666_s3 + $0x188] sm:$0xff]  }
 0x158   :  { %2795 = vmatpush3.bf16.msra.mxu1 %v3058_v35  ;;  %2798 = vmatprep.mubr.msk.bf16.mxu1 %vm460_vm6, %v1506_v8  ;;  %v1753_v35 = vshll.u32 %v2418_v25, 16  ;;  %v1761_v42 = vrot.slane %v1759_v37, 3  ;;  %v1764_v45 = vrot.slane %v1762_v11, 4 }
 0x159   :  { %2796 = vmatprep.subr.bf16.mxu1 %v3059_v39 }
 0x15a   :  { %v1755_v8 = vrot.slane %v1753_v35, 4 }
 0x15c   :  { %2797 = vmatpush3.bf16.msra.mxu1 %v3059_v39  ;;  %v1752_v39 = vrot.slane %v1750_v34, 3 }
 0x15d   :  { %2810 = vmatprep.subr.bf16.mxu1 %v3060_v57 }
 0x15f   :  { %2799 = vmatmul.mubr.msk.bf16.vlgmr.msra.gmra.mrb[0].mxu1 %vm460_vm6, %v1508_v38  ;;  %v1756_v38 = vor.u32 %v1755_v8, %v1752_v39 }
 0x160   :  { %2802 = vmatprep.mubr.msk.bf16.mxu1 %vm460_vm6, %v1510_v29  ;;  %2811 = vmatpush3.bf16.msra.mxu1 %v3060_v57  ;;  %v1748_v57 = vsel %vm918_vm7, %v1738_v33, %v1747_v54  ;;  %v1765_v29 = vor.u32 %v1764_v45, %v1761_v42 }
 0x161   :  { %2812 = vmatprep.subr.bf16.mxu1 %v3061_v9  ;;  %v1757_v4 = vsel %vm918_vm7, %v1747_v54, %v1756_v38 }
 0x162   :  { %v1766_v49 = vsel %vm918_vm7, %v1756_v38, %v1765_v29 }
 0x164   :  { %2813 = vmatpush3.bf16.msra.mxu1 %v3061_v9  ;;  %v3075_v9 = vld [vmem:[%s3666_s3 + $0x190] sm:$0xff]  }
 0x165   :  { %2814 = vmatprep.subr.bf16.mxu1 %v3062_v10 }
 0x167   :  { %2803 = vmatmul.mubr.msk.bf16.gmra.mrb[4].mxu1 %vm460_vm6, %v1512_v63 }
 0x168   :  { %2806 = vmatprep.mubr.msk.bf16.mxu1 %vm460_vm6, %v1514_v2  ;;  %2815 = vmatpush3.bf16.msra.mxu1 %v3062_v10  ;;  %v3078_v10 = vld [vmem:[%s3666_s3 + $0x1a0] sm:$0xff]  }
 0x169   :  { %2816 = vmatprep.subr.bf16.mxu1 %v3064_v59 }
 0x16c   :  { %2817 = vmatpush3.bf16.msra.mxu1 %v3064_v59 }
 0x16d   :  { %2818 = vmatprep.subr.bf16.mxu1 %v3065_v12 }
 0x16f   :  { %2807 = vmatmul.mubr.msk.bf16.gmra.mrb[20].mxu1 %vm460_vm6, %v1513_v52  ;;  %v2433_v52 = vcombine.low %v3523_v47, %v3550_v60  ;;  %v3088_v47 = vmov 0.0|0.0  }
 0x170   :  { %2819 = vmatpush3.bf16.msra.mxu1 %v3065_v12  ;;  %2822 = vmatprep.mubr.msk.bf16.mxu1 %vm460_vm6, %v1730_v43 }
 0x171   :  { %2820 = vmatprep.subr.bf16.mxu1 %v3070_v21  ;;  %2898 = vmatprep.subr.bf16.mxu0 %v3088_v47 }
 0x174   :  { %2821 = vmatpush3.bf16.msra.mxu1 %v3070_v21 }
 0x175   :  { %2834 = vmatprep.subr.bf16.mxu1 %v3071_v32 }
 0x177   :  { %2823 = vmatmul.mubr.msk.bf16.vlgmr.msra.gmra.mrb[0].mxu1 %vm460_vm6, %v1739_v41 }
 0x178   :  { %2826 = vmatprep.mubr.msk.bf16.mxu1 %vm460_vm6, %v1748_v57  ;;  %2835 = vmatpush3.bf16.msra.mxu1 %v3071_v32 }
 0x179   :  { %2836 = vmatprep.subr.bf16.mxu1 %v3073_v36 }
 0x17c   :  { %2837 = vmatpush3.bf16.msra.mxu1 %v3073_v36 }
 0x17d   :  { %2838 = vmatprep.subr.bf16.mxu1 %v3075_v9 }
 0x17f   :  { %2827 = vmatmul.mubr.msk.bf16.gmra.mrb[4].mxu1 %vm460_vm6, %v1757_v4 }
 0x180   :  { %2830 = vmatprep.mubr.msk.bf16.mxu1 %vm460_vm6, %v1766_v49  ;;  %2839 = vmatpush3.bf16.msra.mxu1 %v3075_v9 }
 0x181   :  { %2840 = vmatprep.subr.bf16.mxu1 %v3077_v48 }
 0x184   :  { %2841 = vmatpush3.bf16.msra.mxu1 %v3077_v48 }
 0x185   :  { %2842 = vmatprep.subr.bf16.mxu1 %v3078_v10 }
 0x187   :  { %2831 = vmatmul.mubr.msk.bf16.gmra.mrb[24].mxu1 %vm460_vm6, %v1765_v29 }
 0x188   :  { %2843 = vmatpush3.bf16.msra.mxu1 %v3078_v10  ;;  %2846 = vmatprep.mubr.msk.bf16.mxu1 %vm460_vm6, %v2432_v51 }
 0x189   :  { %2844 = vmatprep.subr.bf16.mxu1 %v3080_v50 }
 0x18c   :  { %2845 = vmatpush3.bf16.msra.mxu1 %v3080_v50 }
 0x18f   :  { %2847 = vmatmul.mubr.msk.bf16.vlgmr.msra.gmra.mrb[0].mxu1 %vm460_vm6, %v2433_v52 }
 0x190   :  { %2850 = vmatprep.mubr.msk.bf16.mxu1 %vm460_vm6, %v2434_v30 }
 0x197   :  { %2851 = vmatmul.mubr.msk.bf16.gmra.mrb[4].mxu1 %vm460_vm6, %v2435_v56 }
 0x198   :  { %2854 = vmatprep.mubr.msk.bf16.mxu1 %vm460_vm6, %v2436_v53 }
 0x19f   :  { %2855 = vmatmul.mubr.msk.bf16.gmra.mrb[28].mxu1 %vm460_vm6, %v2437_v44 }
 0x1f5   :  { %v2664_v55 = vpop.f32.mrb[36].mxu0 }
 0x1f6   :  { %v545_v59 = vpop.f32.mrb[37].mxu0 }
 0x1f7   :  { %v2665_v60 = vpop.f32.mrb[38].mxu0 }
 0x1f8   :  { %v548_v61 = vpop.f32.mrb[39].mxu0 }
 0x1fa   :  { %v2736_v62 = vpop.f32.mrb[8].mxu1 }
 0x1fb   :  { %v1092_v58 = vpop.f32.mrb[9].mxu1 }
 0x1fc   :  { %v2737_v63 = vpop.f32.mrb[10].mxu1 }
 0x1fd   :  { %v1095_v46 = vpop.f32.mrb[11].mxu1 }
 0x20d   :  { %v2688_v1 = vpop.f32.mrb[40].mxu0 }
 0x20e   :  { %v686_v2 = vadd.f32 %v2688_v1, %v2664_v55  ;;  %v677_v3 = vpop.f32.mrb[41].mxu0  ;;  %v2450_v55 = vld [vmem:[%s3668_s4] ss:$0 sm:$0xff] }
 0x20f   :  { %v678_v40 = vadd.f32 %v677_v3, %v545_v59  ;;  %v2689_v6 = vpop.f32.mrb[42].mxu0 }
 0x210   :  { %v680_v12 = vpop.f32.mrb[43].mxu0 }
 0x211   :  { %v681_v13 = vadd.f32 %v680_v12, %v548_v61 }
 0x212   :  { %v2760_v14 = vpop.f32.mrb[12].mxu1 }
 0x213   :  { %v1255_v7 = vpop.f32.mrb[13].mxu1 }
 0x214   :  { %v2761_v15 = vpop.f32.mrb[14].mxu1 }
 0x215   :  { %v1258_v16 = vpop.f32.mrb[15].mxu1  ;;  %v2704_v17 = vpop.f32.mrb[28].mxu0 }
 0x216   :  { %v807_v28 = vpop.f32.mrb[29].mxu0 }
 0x217   :  { %v2705_v18 = vpop.f32.mrb[30].mxu0 }
 0x218   :  { %v810_v19 = vpop.f32.mrb[31].mxu0 }
 0x21d   :  { %v2708_v20 = vpop.f32.mrb[32].mxu0 }
 0x21e   :  { %v823_v21 = vpop.f32.mrb[33].mxu0 }
 0x21f   :  { %v2709_v22 = vpop.f32.mrb[34].mxu0 }
 0x220   :  { %v3621_v23 = vpop.f32.mrb[35].mxu0 }
 0x225   :  { %v2712_v24 = vpop.f32.mrb[44].mxu0 }
 0x226   :  { %v863_v25 = vadd.f32 %v2712_v24, %v686_v2  ;;  %v839_v26 = vpop.f32.mrb[45].mxu0 }
 0x227   :  { %v861_v43 = vadd.f32 %v839_v26, %v678_v40  ;;  %v2713_v27 = vpop.f32.mrb[46].mxu0 }
 0x228   :  { %v1116_v31 = vadd.f32 %v2736_v62, %v863_v25  ;;  %v842_v5 = vpop.f32.mrb[47].mxu0 }
 0x229   :  { %v1114_v33 = vadd.f32 %v1092_v58, %v861_v43  ;;  %v862_v34 = vadd.f32 %v842_v5, %v681_v13 }
 0x22a   :  { %v2784_v32 = vpop.f32.mrb[16].mxu1  ;;  %v1279_v54 = vadd.f32 %v2760_v14, %v1116_v31 }
 0x22b   :  { %v1458_v35 = vpop.f32.mrb[17].mxu1  ;;  %v1115_v11 = vadd.f32 %v1095_v46, %v862_v34  ;;  %v1277_v36 = vadd.f32 %v1255_v7, %v1114_v33 }
 0x22c   :  { %v2785_v37 = vpop.f32.mrb[18].mxu1  ;;  %v1482_v39 = vadd.f32 %v2784_v32, %v1279_v54 }
 0x22d   :  { %v1461_v41 = vpop.f32.mrb[19].mxu1  ;;  %v1480_v8 = vadd.f32 %v1458_v35, %v1277_v36  ;;  %v1278_v57 = vadd.f32 %v1258_v16, %v1115_v11 }
 0x22f   :  { %v1481_v42 = vadd.f32 %v1461_v41, %v1278_v57 }
 0x242   :  { %v2808_v45 = vpop.f32.mrb[20].mxu1 }
 0x243   :  { %v1659_v9 = vadd.f32 %v2808_v45, %v1482_v39  ;;  %v1635_v38 = vpop.f32.mrb[21].mxu1 }
 0x244   :  { %v1657_v29 = vadd.f32 %v1635_v38, %v1480_v8  ;;  %v2809_v48 = vpop.f32.mrb[22].mxu1  ;;  %v2183_v38 = vld [vmem:[%s3669_s6] sm:$0xff] }
 0x245   :  { %v1638_v4 = vpop.f32.mrb[23].mxu1 }
 0x246   :  { %v1658_v49 = vadd.f32 %v1638_v4, %v1481_v42  ;;  %v2104_v4 = vld [vmem:[%s3670_s5] sm:$0x3] }
 0x25a   :  { %v2832_v10 = vpop.f32.mrb[24].mxu1 }
 0x25b   :  { %v1911_v50 = vadd.f32 %v2832_v10, %v1659_v9  ;;  %v1887_v51 = vpop.f32.mrb[25].mxu1  ;;  %v2185_v10 = vld [vmem:[%s3669_s6 + $0x10] sm:$0xff] }
 0x25c   :  { %v1909_v52 = vadd.f32 %v1887_v51, %v1657_v29  ;;  %v2833_v30 = vpop.f32.mrb[26].mxu1  ;;  %v2184_v29 = vld [vmem:[%s3669_s6 + $0x8] sm:$0xff] }
 0x25d   :  { %v1890_v56 = vpop.f32.mrb[27].mxu1  ;;  %v2188_v30 = vld [vmem:[%s3669_s6 + $0x28] sm:$0xff] }
 0x25e   :  { %v1910_v53 = vadd.f32 %v1890_v56, %v1658_v49  ;;  %v2914_v49 = vpack.c.bf16 %v2184_v29, %v2183_v38 }
 0x262   :  { %v2848_v44 = vpop.f32.mrb[0].mxu1 }
 0x263   :  { %v2922_v59 = vadd.f32 %v2848_v44, %v2704_v17  ;;  %v2018_v60 = vpop.f32.mrb[1].mxu1 }
 0x264   :  { %v2923_v61 = vadd.f32 %v2018_v60, %v807_v28  ;;  %v2849_v62 = vpop.f32.mrb[2].mxu1 }
 0x265   :  { %v2084_v58 = vadd.f32 %v2922_v59, %v2450_v55  ;;  %v2924_v63 = vadd.f32 %v2849_v62, %v2705_v18  ;;  %v2021_v46 = vpop.f32.mrb[3].mxu1 }
 0x266   :  { %v2082_v1 = vadd.f32 %v2923_v61, %v2450_v55  ;;  %v2925_v2 = vadd.f32 %v2021_v46, %v810_v19 }
 0x267   :  { %v2085_v3 = vadd.f32 %v2924_v63, %v2450_v55  ;;  %v2095_v6 = vmax.f32 %v2084_v58, 0.0 }
 0x268   :  { %v2083_v40 = vadd.f32 %v2925_v2, %v2450_v55  ;;  %v2093_v13 = vmax.f32 %v2082_v1, 0.0 }
 0x269   :  { %v2096_v12 = vmax.f32 %v2085_v3, 0.0 }
 0x26a   :  { %v2094_v14 = vmax.f32 %v2083_v40, 0.0  ;;  %v2852_v7 = vpop.f32.mrb[4].mxu1 }
 0x26b   :  { %v2902_v15 = vpack.c.bf16 %v2096_v12, %v2095_v6  ;;  %v2926_v16 = vadd.f32 %v2852_v7, %v2708_v20  ;;  %v2034_v24 = vpop.f32.mrb[5].mxu1 }
 0x26c   :  { %v2899_v25 = vpack.c.bf16 %v2094_v14, %v2093_v13  ;;  %v2927_v17 = vadd.f32 %v2034_v24, %v823_v21  ;;  %v2853_v26 = vpop.f32.mrb[6].mxu1 }
 0x26d   :  { %v2088_v28 = vadd.f32 %v2926_v16, %v2450_v55  ;;  %v2928_v43 = vadd.f32 %v2853_v26, %v2709_v22  ;;  %v2037_v27 = vpop.f32.mrb[7].mxu1 }
 0x26e   :  { %v2086_v18 = vadd.f32 %v2927_v17, %v2450_v55  ;;  %v2929_v31 = vadd.f32 %v2037_v27, %v3621_v23  ;;  %2900 = vmatpush3.bf16.msra.mxu0 %v2899_v25 }
 0x26f   :  { %v2089_v19 = vadd.f32 %v2928_v43, %v2450_v55  ;;  %2901 = vmatprep.subr.bf16.mxu0 %v3088_v47  ;;  %v2099_v32 = vmax.f32 %v2088_v28, 0.0 }
 0x270   :  { %v2087_v5 = vadd.f32 %v2929_v31, %v2450_v55  ;;  %v2097_v34 = vmax.f32 %v2086_v18, 0.0 }
 0x271   :  { %v2100_v33 = vmax.f32 %v2089_v19, 0.0 }
 0x272   :  { %v2098_v35 = vmax.f32 %v2087_v5, 0.0  ;;  %v2856_v20 = vpop.f32.mrb[28].mxu1  ;;  %2903 = vmatpush3.bf16.msra.mxu0 %v2902_v15 }
 0x273   :  { %v2908_v54 = vpack.c.bf16 %v2100_v33, %v2099_v32  ;;  %v2074_v21 = vadd.f32 %v2856_v20, %v1911_v50  ;;  %v2050_v37 = vpop.f32.mrb[29].mxu1  ;;  %2904 = vmatprep.subr.bf16.mxu0 %v3088_v47  ;;  %v2186_v50 = vld [vmem:[%s3669_s6 + $0x18] sm:$0xff] }
 0x274   :  { %v2905_v22 = vpack.c.bf16 %v2098_v35, %v2097_v34  ;;  %v2072_v11 = vadd.f32 %v2050_v37, %v1909_v52  ;;  %v2857_v36 = vpop.f32.mrb[30].mxu1  ;;  %v2917_v51 = vpack.c.bf16 %v2186_v50, %v2185_v10  ;;  %v2187_v52 = vld [vmem:[%s3669_s6 + $0x20] sm:$0xff] }
 0x275   :  { %v2053_v23 = vpop.f32.mrb[31].mxu1  ;;  %v2092_v45 = vadd.f32 %v2450_v55, %v2074_v21  ;;  %v2920_v56 = vpack.c.bf16 %v2188_v30, %v2187_v52 }
 0x276   :  { %v2090_v41 = vadd.f32 %v2450_v55, %v2072_v11  ;;  %v2073_v39 = vadd.f32 %v2053_v23, %v1910_v53  ;;  %2906 = vmatpush3.bf16.msra.mxu0 %v2905_v22 }
 0x277   :  { %2907 = vmatprep.subr.bf16.mxu0 %v3088_v47  ;;  %v2103_v48 = vmax.f32 %v2092_v45, 0.0 }
 0x278   :  { %v2091_v8 = vadd.f32 %v2450_v55, %v2073_v39  ;;  %v2101_v57 = vmax.f32 %v2090_v41, 0.0 }
 0x27a   :  { %v2102_v42 = vmax.f32 %v2091_v8, 0.0  ;;  %2909 = vmatpush3.bf16.msra.mxu0 %v2908_v54 }
 0x27b   :  { %2910 = vmatprep.subr.bf16.mxu0 %v3088_v47 }
 0x27c   :  { %v2911_v9 = vpack.c.bf16 %v2102_v42, %v2101_v57 }
 0x27e   :  { %2912 = vmatpush3.bf16.msra.mxu0 %v2911_v9 }
 0x27f   :  { %2878 = vmatprep.subr.mxu0 %v3085_v0 }
 0x282   :  { %2879 = vmatpush3.msk.msra.mxu0 %vm2109_vm10, %v2103_v48 }
 0x283   :  { %2881 = vmatmul.mubr.msk.f32.vlgmr.msra.gmra.mrb[48].mxu0 %vm2105_vm11, %v2104_v4  ;;  %2913 = vmatprep.subr.bf16.mxu0 %v3088_v47 }
 0x284   :  { %2915 = vmatpush3.bf16.msra.mxu0 %v2914_v49  ;;  %2895 = vmatprep.mubr.msk.f32.mxu0 %vm3086_vm1, %v3085_v0  ;;  %v2453_v0 = vld [vmem:[%s3671_s7] ss:$0 sm:$0xff] }
 0x285   :  { %2916 = vmatprep.subr.bf16.mxu0 %v3088_v47 }
 0x288   :  { %2918 = vmatpush3.bf16.msra.mxu0 %v2917_v51 }
 0x289   :  { %2919 = vmatprep.subr.bf16.mxu0 %v3088_v47 }
 0x28c   :  { %2921 = vmatpush3.bf16.msra.mxu0 %v2920_v56 }
 0x356   :  { %v2179_v53 = vpop.f32.mrb[48].mxu0 }
 0x357   :  { %v2882_v44 = vpop.f32.mrb[49].mxu0  ;;  %2896 = vmatmul.mubr.msk.f32.vlgmr.msra.gmra.mrb[50].mxu0 %vm2196_vm12, %v2179_v53 }
 0x42a   :  { %v2266_v55 = vpop.f32.mrb[50].mxu0 }
 0x42b   :  { %v2267_v59 = vadd.f32 %v2453_v0, %v2266_v55  ;;  %v2897_v60 = vpop.f32.mrb[51].mxu0 }
 0x42d   :  { %2270 = vst [vmem:[%s3672_s8] sm:$0x3] %v2267_v59 }

</bundles_post_ra>
